<compile_context>
chip_gen: v5e
topology: v5e:2x2
jax: 0.10.0
libtpu: 0.0.40
codegen_flags: <defaults>
</compile_context>

<pallas_src>
import functools

import jax
import jax.numpy as jnp
from jax.experimental import pallas as pl
from jax.experimental.pallas import tpu as pltpu


def _mfm_kernel(x_ref, y_ref,
                w1x_ref, w1y_ref, b1_ref,
                wl1_ref, bl1_ref, wl2_ref, bl2_ref,
                wg1_ref, bg1_ref, wg2_ref, bg2_ref,
                o_ref, *, d_block, hw):
    """One (sample, depth-chunk) slab, channels-first: data refs are (C, d_block*hw)."""
    f32 = jnp.float32
    x = x_ref[...].astype(f32)                       # (Cx, n)
    y = y_ref[...].astype(f32)                       # (Cy, n)

    # ---- layer1: conv1x1x1(cat(x, y)) with BN1 scale folded into the weights.
    # The concat never materializes: W1 @ [x; y] == W1x @ x + W1y @ y.
    a = (jnp.dot(w1x_ref[...], x, preferred_element_type=f32)
         + jnp.dot(w1y_ref[...], y, preferred_element_type=f32)
         + b1_ref[...])
    a = jnp.maximum(a, 0.0)                          # (Cout, n)

    # ---- local attention branch: conv -> bn -> relu -> conv -> bn
    # (whole-slab, lane-dense MXU matmuls).
    h = jnp.maximum(
        jnp.dot(wl1_ref[...], a, preferred_element_type=f32) + bl1_ref[...], 0.0)
    local = jnp.dot(wl2_ref[...], h, preferred_element_type=f32) + bl2_ref[...]

    wg1 = wg1_ref[...]   # (Cmid, Cout), already includes the 1/hw pooling scale
    bg1 = bg1_ref[...]
    wg2 = wg2_ref[...]
    bg2 = bg2_ref[...]

    # ---- per-depth-slice global branch + fuse.
    # Static slices are free views; the spatial sum is an XLU lane reduce; the
    # tiny (C, 1) global matmuls are negligible; each fused slice is written
    # straight to o_ref, so no whole-slab g_full / att temporaries are kept.
    for d in range(d_block):
        sl = slice(d * hw, (d + 1) * hw)
        a_d = a[:, sl]                                              # (Cout, hw)
        pooled = jnp.sum(a_d, axis=-1, keepdims=True)               # (Cout, 1)
        g = jnp.maximum(jnp.dot(wg1, pooled, preferred_element_type=f32) + bg1, 0.0)
        g = jnp.dot(wg2, g, preferred_element_type=f32) + bg2       # (Cout, 1)
        att = jax.nn.sigmoid(local[:, sl] + g)                      # bcast over lanes
        o_ref[:, sl] = (y[:, sl] + a_d * att).astype(o_ref.dtype)


def _fold_bn(w, bn, eps):
    """Fold eval-mode BN into conv weight (Cout, Cin); return (w', bias(Cout,1))."""
    gamma, beta, mean, var = bn
    s = gamma / jnp.sqrt(var + eps)
    return w * s[:, None], (beta - mean * s)[:, None]


def _vmem_budget():
    """(block-picker budget, scoped vmem limit) derived from the chip's VMEM."""
    try:
        cap = pltpu.get_tpu_info().vmem_capacity_bytes
    except Exception:
        cap = 64 * 1024 * 1024     # conservative fallback: v7x per-TC VMEM
    return cap // 3, cap // 2


def _pick_d_block(D, HW, N, cx, cy, cout, cmid, in_bytes, out_bytes, budget_bytes,
                  max_unroll=32, min_grid_steps=4, target_lanes=1536):
    """Pick a depth chunk size: lane-aligned, VMEM-safe, roofline- and occupancy-aware."""
    def vmem_per_step(d):
        blk = d * HW
        # double-buffered pipeline blocks for x, y, out (in their HBM dtypes)
        io = 2 * blk * ((cx + cy) * in_bytes + cout * out_bytes)
        # live f32 in-kernel temporaries: x, y, a, h, local (+ slack for the fuse slice)
        live = blk * (cx + cy + 2 * cout + cmid + cout) * 4
        consts = 1 << 20            # padded weight/bias tiles + misc slack
        return io + live + consts

    # last block dim must be a multiple of 128 (or the full extent d == D)
    aligned = [d for d in range(1, D + 1)
               if D % d == 0 and ((d * HW) % 128 == 0 or d == D)]
    fitting = [d for d in aligned
               if d <= max_unroll and vmem_per_step(d) <= budget_bytes]
    if not fitting:
        return min(aligned)         # correctness-first fallback

    # prefer the smallest chunk that already reaches a roofline-friendly lane
    # width; otherwise take the biggest that fits the budget.
    big_enough = [d for d in fitting if d * HW >= target_lanes]
    d_blk = min(big_enough) if big_enough else max(fitting)

    # keep both v7x TensorCores busy / amortize the ~0.35us per-step overhead.
    while N * (D // d_blk) < min_grid_steps:
        smaller = [d for d in fitting if d < d_blk]
        if not smaller:
            break
        d_blk = max(smaller)
    return d_blk


def mfm_pallas(x, y, params, eps=1e-5, io_dtype=None, out_dtype=None):
    """MFM.forward (eval mode).

    x: (N, Cx, D, H, W), y: (N, Cy, D, H, W), NCDHW like PyTorch.
    params: dict with 1x1x1 conv weights as (Cout, Cin) matrices and BN tuples
            (gamma, beta, running_mean, running_var):
        'w1','bn1'                : conv1x1x1(Cx+Cy -> Cout) + BatchNorm3d (layer1)
        'wl1','bnl1','wl2','bnl2' : local_att_layer convs/BNs
        'wg1','bng1','wg2','bng2' : global_att_layer convs/BNs
    io_dtype: if given (e.g. jnp.bfloat16), x/y are stored/read in this dtype
              and the output is produced in it (halves HBM traffic); all
              in-kernel compute and accumulation stay float32.
    Returns (N, Cout, D, H, W) with Cout == Cy.
    """
    if io_dtype is not None:
        x = x.astype(io_dtype)
        y = y.astype(io_dtype)
    out_dtype = out_dtype if out_dtype is not None else y.dtype

    N, Cx, D, H, W = x.shape
    Ny, Cy, Dy, Hy, Wy = y.shape
    assert (N, D, H, W) == (Ny, Dy, Hy, Wy)
    HW = H * W

    w1, bn1 = params['w1'], params['bn1']
    wl1, bnl1 = params['wl1'], params['bnl1']
    wl2, bnl2 = params['wl2'], params['bnl2']
    wg1, bng1 = params['wg1'], params['bng1']
    wg2, bng2 = params['wg2'], params['bng2']
    Cout = w1.shape[0]
    Cmid = wl1.shape[0]
    assert w1.shape[1] == Cx + Cy
    assert Cout == Cy, "residual add requires out_channel == channels(y)"

    # Fold eval-mode BatchNorm scales into the conv weights (biases kept).
    w1f, b1 = _fold_bn(w1, bn1, eps)
    wl1f, bl1 = _fold_bn(wl1, bnl1, eps)
    wl2f, bl2 = _fold_bn(wl2, bnl2, eps)
    wg1f, bg1 = _fold_bn(wg1, bng1, eps)
    wg2f, bg2 = _fold_bn(wg2, bng2, eps)
    # Split w1 so the channel concat never materializes.
    w1x, w1y = w1f[:, :Cx], w1f[:, Cx:]
    # Fold the AdaptiveAvgPool 1/HW mean scale into the first global-branch weight.
    wg1f = wg1f * (1.0 / HW)

    # Free reshapes: (N, C, D, H, W) -> (N, C, D*H*W); no transpose, no pad.
    xr = x.reshape(N, Cx, D * HW)
    yr = y.reshape(N, Cy, D * HW)

    budget_bytes, vmem_limit = _vmem_budget()
    d_blk = _pick_d_block(D, HW, N, Cx, Cy, Cout, Cmid,
                          jnp.dtype(x.dtype).itemsize,
                          jnp.dtype(out_dtype).itemsize,
                          budget_bytes)
    n_dblk = D // d_blk
    blk = d_blk * HW

    kernel = functools.partial(_mfm_kernel, d_block=d_blk, hw=HW)
    data_map = lambda n, j: (n, 0, j)
    const2 = lambda n, j: (0, 0)

    out = pl.pallas_call(
        kernel,
        out_shape=jax.ShapeDtypeStruct((N, Cout, D * HW), out_dtype),
        grid=(N, n_dblk),
        in_specs=[
            pl.BlockSpec((None, Cx, blk), data_map),      # x slab
            pl.BlockSpec((None, Cy, blk), data_map),      # y slab (conv1 + residual)
            pl.BlockSpec((Cout, Cx), const2),             # w1 (x part, BN folded)
            pl.BlockSpec((Cout, Cy), const2),             # w1 (y part, BN folded)
            pl.BlockSpec((Cout, 1), const2),              # bn1 bias
            pl.BlockSpec((Cmid, Cout), const2),           # local conv1
            pl.BlockSpec((Cmid, 1), const2),              # local bn1 bias
            pl.BlockSpec((Cout, Cmid), const2),           # local conv2
            pl.BlockSpec((Cout, 1), const2),              # local bn2 bias
            pl.BlockSpec((Cmid, Cout), const2),           # global conv1 (/HW folded)
            pl.BlockSpec((Cmid, 1), const2),              # global bn1 bias
            pl.BlockSpec((Cout, Cmid), const2),           # global conv2
            pl.BlockSpec((Cout, 1), const2),              # global bn2 bias
        ],
        out_specs=pl.BlockSpec((None, Cout, blk), data_map),
        compiler_params=pltpu.CompilerParams(
            dimension_semantics=("parallel", "parallel"),
            vmem_limit_bytes=vmem_limit),
    )(xr, yr, w1x, w1y, b1, wl1f, bl1, wl2f, bl2, wg1f, bg1, wg2f, bg2)

    return out.reshape(N, Cout, D, H, W)


def _reference(x, y, params, eps=1e-5):
    """Pure-JAX (XLA) reference implementation of MFM.forward (eval mode)."""
    def conv(inp, w):   # w: (Cout, Cin), inp: NCDHW
        return jnp.einsum('oc,ncdhw->nodhw', w, inp,
                          precision=jax.lax.Precision.HIGHEST)

    def bn(inp, p):
        gamma, beta, mean, var = p
        s = gamma / jnp.sqrt(var + eps)
        b = beta - mean * s
        return inp * s[None, :, None, None, None] + b[None, :, None, None, None]

    z = jnp.concatenate([x, y], axis=1)
    a = jax.nn.relu(bn(conv(z, params['w1']), params['bn1']))
    local = bn(conv(jax.nn.relu(bn(conv(a, params['wl1']), params['bnl1'])),
                    params['wl2']), params['bnl2'])
    pooled = jnp.mean(a, axis=(3, 4), keepdims=True)          # AdaptiveAvgPool2d(1)
    glob = bn(conv(jax.nn.relu(bn(conv(pooled, params['wg1']), params['bng1'])),
                   params['wg2']), params['bng2'])
    att = jax.nn.sigmoid(local + glob)
    return y + a * att


if __name__ == "__main__":
    # Small shapes consistent with the module: out_channel == channels(y).
    N, Cx, Cy, D, H, W = 2, 8, 8, 4, 16, 16
    Cout, Cmid = Cy, Cy // 4
    Cin = Cx + Cy

    key = jax.random.PRNGKey(0)
    ks = jax.random.split(key, 32)

    def bn_params(c, i0):
        gamma = 1.0 + 0.1 * jax.random.normal(ks[i0], (c,), jnp.float32)
        beta = 0.1 * jax.random.normal(ks[i0 + 1], (c,), jnp.float32)
        mean = 0.05 * jax.random.normal(ks[i0 + 2], (c,), jnp.float32)
        var = jnp.abs(1.0 + 0.1 * jax.random.normal(ks[i0 + 3], (c,), jnp.float32))
        return (gamma, beta, mean, var)

    x = jax.random.normal(ks[0], (N, Cx, D, H, W), jnp.float32)
    y = jax.random.normal(ks[1], (N, Cy, D, H, W), jnp.float32)

    params = {
        'w1': 0.2 * jax.random.normal(ks[2], (Cout, Cin), jnp.float32),
        'bn1': bn_params(Cout, 3),
        'wl1': 0.2 * jax.random.normal(ks[7], (Cmid, Cout), jnp.float32),
        'bnl1': bn_params(Cmid, 8),
        'wl2': 0.2 * jax.random.normal(ks[12], (Cout, Cmid), jnp.float32),
        'bnl2': bn_params(Cout, 13),
        'wg1': 0.2 * jax.random.normal(ks[17], (Cmid, Cout), jnp.float32),
        'bng1': bn_params(Cmid, 18),
        'wg2': 0.2 * jax.random.normal(ks[22], (Cout, Cmid), jnp.float32),
        'bng2': bn_params(Cout, 23),
    }

    # --- f32 HBM I/O path (reference precision) ---
    out = jax.block_until_ready(mfm_pallas(x, y, params))
    ref = _reference(x, y, params)
    assert out.shape == (N, Cy, D, H, W)
    err = float(jnp.max(jnp.abs(out - ref)))
    assert jnp.allclose(out, ref, atol=1e-3, rtol=1e-3), f"f32 mismatch vs reference: {err:.3e}"

    # --- bf16 HBM I/O path (halves x/y/out HBM bytes; compute stays f32) ---
    out_b = jax.block_until_ready(mfm_pallas(x, y, params, io_dtype=jnp.bfloat16))
    ref_b = _reference(x.astype(jnp.bfloat16).astype(jnp.float32),
                       y.astype(jnp.bfloat16).astype(jnp.float32), params)
    assert out_b.dtype == jnp.bfloat16
    err_b = float(jnp.max(jnp.abs(out_b.astype(jnp.float32) - ref_b)))
    assert jnp.allclose(out_b.astype(jnp.float32), ref_b, atol=3e-2, rtol=3e-2), \
        f"bf16 mismatch vs reference: {err_b:.3e}"

    print("KERNEL_OK")
</pallas_src>

<mosaic_0001>
module attributes {stable_mosaic.version = 11 : i64} {
  func.func @_mfm_kernel(%arg0: i32, %arg1: i32, %arg2: memref<1x8x512xf32, #tpu.memory_space<vmem>>, %arg3: memref<1x8x512xf32, #tpu.memory_space<vmem>>, %arg4: memref<8x8xf32, #tpu.memory_space<vmem>>, %arg5: memref<8x8xf32, #tpu.memory_space<vmem>>, %arg6: memref<8x1xf32, #tpu.memory_space<vmem>>, %arg7: memref<2x8xf32, #tpu.memory_space<vmem>>, %arg8: memref<2x1xf32, #tpu.memory_space<vmem>>, %arg9: memref<8x2xf32, #tpu.memory_space<vmem>>, %arg10: memref<8x1xf32, #tpu.memory_space<vmem>>, %arg11: memref<2x8xf32, #tpu.memory_space<vmem>>, %arg12: memref<2x1xf32, #tpu.memory_space<vmem>>, %arg13: memref<8x2xf32, #tpu.memory_space<vmem>>, %arg14: memref<8x1xf32, #tpu.memory_space<vmem>>, %arg15: memref<1x8x512xf32, #tpu.memory_space<vmem>>) attributes {dimension_semantics = [#tpu.dimension_semantics<parallel>, #tpu.dimension_semantics<parallel>], iteration_bounds = array<i64: 2, 2>, scalar_prefetch = 0 : i64, scratch_operands = 0 : i64, tpu.core_type = #tpu.core_type<tc>, window_params = [{transform_indices = @transform_0, window_bounds = array<i64: 1, 8, 512>}, {transform_indices = @transform_1, window_bounds = array<i64: 1, 8, 512>}, {pipeline_mode = #tpu.pipeline_mode<synchronous>, transform_indices = @transform_2, window_bounds = array<i64: 8, 8>}, {pipeline_mode = #tpu.pipeline_mode<synchronous>, transform_indices = @transform_3, window_bounds = array<i64: 8, 8>}, {pipeline_mode = #tpu.pipeline_mode<synchronous>, transform_indices = @transform_4, window_bounds = array<i64: 8, 1>}, {pipeline_mode = #tpu.pipeline_mode<synchronous>, transform_indices = @transform_5, window_bounds = array<i64: 2, 8>}, {pipeline_mode = #tpu.pipeline_mode<synchronous>, transform_indices = @transform_6, window_bounds = array<i64: 2, 1>}, {pipeline_mode = #tpu.pipeline_mode<synchronous>, transform_indices = @transform_7, window_bounds = array<i64: 8, 2>}, {pipeline_mode = #tpu.pipeline_mode<synchronous>, transform_indices = @transform_8, window_bounds = array<i64: 8, 1>}, {pipeline_mode = #tpu.pipeline_mode<synchronous>, transform_indices = @transform_9, window_bounds = array<i64: 2, 8>}, {pipeline_mode = #tpu.pipeline_mode<synchronous>, transform_indices = @transform_10, window_bounds = array<i64: 2, 1>}, {pipeline_mode = #tpu.pipeline_mode<synchronous>, transform_indices = @transform_11, window_bounds = array<i64: 8, 2>}, {pipeline_mode = #tpu.pipeline_mode<synchronous>, transform_indices = @transform_12, window_bounds = array<i64: 8, 1>}, {transform_indices = @transform_13, window_bounds = array<i64: 1, 8, 512>}]} {
    %c0 = arith.constant 0 : index
    %c0_0 = arith.constant 0 : index
    %c0_1 = arith.constant 0 : index
    %0 = vector.load %arg2[%c0, %c0_0, %c0_1] : memref<1x8x512xf32, #tpu.memory_space<vmem>>, vector<1x8x512xf32>
    %1 = vector.shape_cast %0 : vector<1x8x512xf32> to vector<8x512xf32>
    %c0_2 = arith.constant 0 : index
    %c0_3 = arith.constant 0 : index
    %c0_4 = arith.constant 0 : index
    %2 = vector.load %arg3[%c0_2, %c0_3, %c0_4] : memref<1x8x512xf32, #tpu.memory_space<vmem>>, vector<1x8x512xf32>
    %3 = vector.shape_cast %2 : vector<1x8x512xf32> to vector<8x512xf32>
    %c0_5 = arith.constant 0 : index
    %c0_6 = arith.constant 0 : index
    %4 = vector.load %arg4[%c0_5, %c0_6] : memref<8x8xf32, #tpu.memory_space<vmem>>, vector<8x8xf32>
    %cst = arith.constant dense<0.000000e+00> : vector<8x512xf32>
    %5 = tpu.matmul %4, %1, %cst {dimension_numbers = #tpu.dot_dimension_numbers<[1], [0], [0], [1], [0, 0, 1, 1], [], []>} : vector<8x8xf32>, vector<8x512xf32>, vector<8x512xf32> -> vector<8x512xf32>
    %c0_7 = arith.constant 0 : index
    %c0_8 = arith.constant 0 : index
    %6 = vector.load %arg5[%c0_7, %c0_8] : memref<8x8xf32, #tpu.memory_space<vmem>>, vector<8x8xf32>
    %cst_9 = arith.constant dense<0.000000e+00> : vector<8x512xf32>
    %7 = tpu.matmul %6, %3, %cst_9 {dimension_numbers = #tpu.dot_dimension_numbers<[1], [0], [0], [1], [0, 0, 1, 1], [], []>} : vector<8x8xf32>, vector<8x512xf32>, vector<8x512xf32> -> vector<8x512xf32>
    %8 = arith.addf %5, %7 : vector<8x512xf32>
    %c0_10 = arith.constant 0 : index
    %c0_11 = arith.constant 0 : index
    %9 = vector.load %arg6[%c0_10, %c0_11] : memref<8x1xf32, #tpu.memory_space<vmem>>, vector<8x1xf32>
    %10 = vector.broadcast %9 : vector<8x1xf32> to vector<8x512xf32>
    %11 = arith.addf %8, %10 : vector<8x512xf32>
    %cst_12 = arith.constant 0.000000e+00 : f32
    %12 = vector.broadcast %cst_12 : f32 to vector<8x512xf32>
    %13 = arith.maximumf %11, %12 : vector<8x512xf32>
    %c0_13 = arith.constant 0 : index
    %c0_14 = arith.constant 0 : index
    %14 = vector.load %arg7[%c0_13, %c0_14] : memref<2x8xf32, #tpu.memory_space<vmem>>, vector<2x8xf32>
    %cst_15 = arith.constant dense<0.000000e+00> : vector<2x512xf32>
    %15 = tpu.matmul %14, %13, %cst_15 {dimension_numbers = #tpu.dot_dimension_numbers<[1], [0], [0], [1], [0, 0, 1, 1], [], []>} : vector<2x8xf32>, vector<8x512xf32>, vector<2x512xf32> -> vector<2x512xf32>
    %c0_16 = arith.constant 0 : index
    %c0_17 = arith.constant 0 : index
    %16 = vector.load %arg8[%c0_16, %c0_17] : memref<2x1xf32, #tpu.memory_space<vmem>>, vector<2x1xf32>
    %17 = vector.broadcast %16 : vector<2x1xf32> to vector<2x512xf32>
    %18 = arith.addf %15, %17 : vector<2x512xf32>
    %cst_18 = arith.constant 0.000000e+00 : f32
    %19 = vector.broadcast %cst_18 : f32 to vector<2x512xf32>
    %20 = arith.maximumf %18, %19 : vector<2x512xf32>
    %c0_19 = arith.constant 0 : index
    %c0_20 = arith.constant 0 : index
    %21 = vector.load %arg9[%c0_19, %c0_20] : memref<8x2xf32, #tpu.memory_space<vmem>>, vector<8x2xf32>
    %cst_21 = arith.constant dense<0.000000e+00> : vector<8x512xf32>
    %22 = tpu.matmul %21, %20, %cst_21 {dimension_numbers = #tpu.dot_dimension_numbers<[1], [0], [0], [1], [0, 0, 1, 1], [], []>} : vector<8x2xf32>, vector<2x512xf32>, vector<8x512xf32> -> vector<8x512xf32>
    %c0_22 = arith.constant 0 : index
    %c0_23 = arith.constant 0 : index
    %23 = vector.load %arg10[%c0_22, %c0_23] : memref<8x1xf32, #tpu.memory_space<vmem>>, vector<8x1xf32>
    %24 = vector.broadcast %23 : vector<8x1xf32> to vector<8x512xf32>
    %25 = arith.addf %22, %24 : vector<8x512xf32>
    %c0_24 = arith.constant 0 : index
    %c0_25 = arith.constant 0 : index
    %26 = vector.load %arg11[%c0_24, %c0_25] : memref<2x8xf32, #tpu.memory_space<vmem>>, vector<2x8xf32>
    %c0_26 = arith.constant 0 : index
    %c0_27 = arith.constant 0 : index
    %27 = vector.load %arg12[%c0_26, %c0_27] : memref<2x1xf32, #tpu.memory_space<vmem>>, vector<2x1xf32>
    %c0_28 = arith.constant 0 : index
    %c0_29 = arith.constant 0 : index
    %28 = vector.load %arg13[%c0_28, %c0_29] : memref<8x2xf32, #tpu.memory_space<vmem>>, vector<8x2xf32>
    %c0_30 = arith.constant 0 : index
    %c0_31 = arith.constant 0 : index
    %29 = vector.load %arg14[%c0_30, %c0_31] : memref<8x1xf32, #tpu.memory_space<vmem>>, vector<8x1xf32>
    %30 = vector.extract_strided_slice %13 {offsets = [0, 0], sizes = [8, 256], strides = [1, 1]} : vector<8x512xf32> to vector<8x256xf32>
    %cst_32 = arith.constant dense<0.000000e+00> : vector<8xf32>
    %31 = vector.multi_reduction <add>, %30, %cst_32 [1] : vector<8x256xf32> to vector<8xf32>
    %32 = vector.shape_cast %31 : vector<8xf32> to vector<8x1xf32>
    %cst_33 = arith.constant dense<0.000000e+00> : vector<2x1xf32>
    %33 = tpu.matmul %26, %32, %cst_33 {dimension_numbers = #tpu.dot_dimension_numbers<[1], [0], [0], [1], [0, 0, 1, 1], [], []>} : vector<2x8xf32>, vector<8x1xf32>, vector<2x1xf32> -> vector<2x1xf32>
    %34 = arith.addf %33, %27 : vector<2x1xf32>
    %cst_34 = arith.constant 0.000000e+00 : f32
    %35 = vector.broadcast %cst_34 : f32 to vector<2x1xf32>
    %36 = arith.maximumf %34, %35 : vector<2x1xf32>
    %cst_35 = arith.constant dense<0.000000e+00> : vector<8x1xf32>
    %37 = tpu.matmul %28, %36, %cst_35 {dimension_numbers = #tpu.dot_dimension_numbers<[1], [0], [0], [1], [0, 0, 1, 1], [], []>} : vector<8x2xf32>, vector<2x1xf32>, vector<8x1xf32> -> vector<8x1xf32>
    %38 = arith.addf %37, %29 : vector<8x1xf32>
    %39 = vector.extract_strided_slice %25 {offsets = [0, 0], sizes = [8, 256], strides = [1, 1]} : vector<8x512xf32> to vector<8x256xf32>
    %40 = vector.broadcast %38 : vector<8x1xf32> to vector<8x256xf32>
    %41 = arith.addf %39, %40 : vector<8x256xf32>
    %42 = arith.negf %41 : vector<8x256xf32>
    %43 = math.exp %42 : vector<8x256xf32>
    %cst_36 = arith.constant 1.000000e+00 : f32
    %44 = vector.broadcast %cst_36 : f32 to vector<8x256xf32>
    %45 = arith.addf %44, %43 : vector<8x256xf32>
    %46 = arith.divf %44, %45 : vector<8x256xf32>
    %47 = vector.extract_strided_slice %3 {offsets = [0, 0], sizes = [8, 256], strides = [1, 1]} : vector<8x512xf32> to vector<8x256xf32>
    %48 = arith.mulf %30, %46 : vector<8x256xf32>
    %49 = arith.addf %47, %48 : vector<8x256xf32>
    %c0_37 = arith.constant 0 : index
    %c0_38 = arith.constant 0 : index
    %c0_39 = arith.constant 0 : index
    %50 = vector.load %arg15[%c0_37, %c0_38, %c0_39] : memref<1x8x512xf32, #tpu.memory_space<vmem>>, vector<1x8x256xf32>
    %51 = vector.shape_cast %50 : vector<1x8x256xf32> to vector<8x256xf32>
    %52 = vector.shape_cast %49 : vector<8x256xf32> to vector<1x8x256xf32>
    tpu.vector_store %arg15[%c0_37, %c0_38, %c0_39], %52 {strides = array<i32>} : memref<1x8x512xf32, #tpu.memory_space<vmem>>, vector<1x8x256xf32>,
    %53 = vector.extract_strided_slice %13 {offsets = [0, 256], sizes = [8, 256], strides = [1, 1]} : vector<8x512xf32> to vector<8x256xf32>
    %cst_40 = arith.constant dense<0.000000e+00> : vector<8xf32>
    %54 = vector.multi_reduction <add>, %53, %cst_40 [1] : vector<8x256xf32> to vector<8xf32>
    %55 = vector.shape_cast %54 : vector<8xf32> to vector<8x1xf32>
    %cst_41 = arith.constant dense<0.000000e+00> : vector<2x1xf32>
    %56 = tpu.matmul %26, %55, %cst_41 {dimension_numbers = #tpu.dot_dimension_numbers<[1], [0], [0], [1], [0, 0, 1, 1], [], []>} : vector<2x8xf32>, vector<8x1xf32>, vector<2x1xf32> -> vector<2x1xf32>
    %57 = arith.addf %56, %27 : vector<2x1xf32>
    %cst_42 = arith.constant 0.000000e+00 : f32
    %58 = vector.broadcast %cst_42 : f32 to vector<2x1xf32>
    %59 = arith.maximumf %57, %58 : vector<2x1xf32>
    %cst_43 = arith.constant dense<0.000000e+00> : vector<8x1xf32>
    %60 = tpu.matmul %28, %59, %cst_43 {dimension_numbers = #tpu.dot_dimension_numbers<[1], [0], [0], [1], [0, 0, 1, 1], [], []>} : vector<8x2xf32>, vector<2x1xf32>, vector<8x1xf32> -> vector<8x1xf32>
    %61 = arith.addf %60, %29 : vector<8x1xf32>
    %62 = vector.extract_strided_slice %25 {offsets = [0, 256], sizes = [8, 256], strides = [1, 1]} : vector<8x512xf32> to vector<8x256xf32>
    %63 = vector.broadcast %61 : vector<8x1xf32> to vector<8x256xf32>
    %64 = arith.addf %62, %63 : vector<8x256xf32>
    %65 = arith.negf %64 : vector<8x256xf32>
    %66 = math.exp %65 : vector<8x256xf32>
    %cst_44 = arith.constant 1.000000e+00 : f32
    %67 = vector.broadcast %cst_44 : f32 to vector<8x256xf32>
    %68 = arith.addf %67, %66 : vector<8x256xf32>
    %69 = arith.divf %67, %68 : vector<8x256xf32>
    %70 = vector.extract_strided_slice %3 {offsets = [0, 256], sizes = [8, 256], strides = [1, 1]} : vector<8x512xf32> to vector<8x256xf32>
    %71 = arith.mulf %53, %69 : vector<8x256xf32>
    %72 = arith.addf %70, %71 : vector<8x256xf32>
    %c0_45 = arith.constant 0 : index
    %c0_46 = arith.constant 0 : index
    %c256 = arith.constant 256 : index
    %73 = vector.load %arg15[%c0_45, %c0_46, %c256] : memref<1x8x512xf32, #tpu.memory_space<vmem>>, vector<1x8x256xf32>
    %74 = vector.shape_cast %73 : vector<1x8x256xf32> to vector<8x256xf32>
    %75 = vector.shape_cast %72 : vector<8x256xf32> to vector<1x8x256xf32>
    tpu.vector_store %arg15[%c0_45, %c0_46, %c256], %75 {strides = array<i32>} : memref<1x8x512xf32, #tpu.memory_space<vmem>>, vector<1x8x256xf32>,
    return
  }
  func.func @transform_0(%arg0: i32, %arg1: i32) -> (i32, i32, i32) {
    %c0_i32 = arith.constant 0 : i32
    %c0_i32_0 = arith.constant 0 : i32
    return %arg0, %c0_i32, %arg1 : i32, i32, i32
  }
  func.func @transform_1(%arg0: i32, %arg1: i32) -> (i32, i32, i32) {
    %c0_i32 = arith.constant 0 : i32
    %c0_i32_0 = arith.constant 0 : i32
    return %arg0, %c0_i32, %arg1 : i32, i32, i32
  }
  func.func @transform_2(%arg0: i32, %arg1: i32) -> (i32, i32) {
    %c0_i32 = arith.constant 0 : i32
    %c0_i32_0 = arith.constant 0 : i32
    %c0_i32_1 = arith.constant 0 : i32
    return %c0_i32, %c0_i32_0 : i32, i32
  }
  func.func @transform_3(%arg0: i32, %arg1: i32) -> (i32, i32) {
    %c0_i32 = arith.constant 0 : i32
    %c0_i32_0 = arith.constant 0 : i32
    %c0_i32_1 = arith.constant 0 : i32
    return %c0_i32, %c0_i32_0 : i32, i32
  }
  func.func @transform_4(%arg0: i32, %arg1: i32) -> (i32, i32) {
    %c0_i32 = arith.constant 0 : i32
    %c0_i32_0 = arith.constant 0 : i32
    %c0_i32_1 = arith.constant 0 : i32
    return %c0_i32, %c0_i32_0 : i32, i32
  }
  func.func @transform_5(%arg0: i32, %arg1: i32) -> (i32, i32) {
    %c0_i32 = arith.constant 0 : i32
    %c0_i32_0 = arith.constant 0 : i32
    %c0_i32_1 = arith.constant 0 : i32
    return %c0_i32, %c0_i32_0 : i32, i32
  }
  func.func @transform_6(%arg0: i32, %arg1: i32) -> (i32, i32) {
    %c0_i32 = arith.constant 0 : i32
    %c0_i32_0 = arith.constant 0 : i32
    %c0_i32_1 = arith.constant 0 : i32
    return %c0_i32, %c0_i32_0 : i32, i32
  }
  func.func @transform_7(%arg0: i32, %arg1: i32) -> (i32, i32) {
    %c0_i32 = arith.constant 0 : i32
    %c0_i32_0 = arith.constant 0 : i32
    %c0_i32_1 = arith.constant 0 : i32
    return %c0_i32, %c0_i32_0 : i32, i32
  }
  func.func @transform_8(%arg0: i32, %arg1: i32) -> (i32, i32) {
    %c0_i32 = arith.constant 0 : i32
    %c0_i32_0 = arith.constant 0 : i32
    %c0_i32_1 = arith.constant 0 : i32
    return %c0_i32, %c0_i32_0 : i32, i32
  }
  func.func @transform_9(%arg0: i32, %arg1: i32) -> (i32, i32) {
    %c0_i32 = arith.constant 0 : i32
    %c0_i32_0 = arith.constant 0 : i32
    %c0_i32_1 = arith.constant 0 : i32
    return %c0_i32, %c0_i32_0 : i32, i32
  }
  func.func @transform_10(%arg0: i32, %arg1: i32) -> (i32, i32) {
    %c0_i32 = arith.constant 0 : i32
    %c0_i32_0 = arith.constant 0 : i32
    %c0_i32_1 = arith.constant 0 : i32
    return %c0_i32, %c0_i32_0 : i32, i32
  }
  func.func @transform_11(%arg0: i32, %arg1: i32) -> (i32, i32) {
    %c0_i32 = arith.constant 0 : i32
    %c0_i32_0 = arith.constant 0 : i32
    %c0_i32_1 = arith.constant 0 : i32
    return %c0_i32, %c0_i32_0 : i32, i32
  }
  func.func @transform_12(%arg0: i32, %arg1: i32) -> (i32, i32) {
    %c0_i32 = arith.constant 0 : i32
    %c0_i32_0 = arith.constant 0 : i32
    %c0_i32_1 = arith.constant 0 : i32
    return %c0_i32, %c0_i32_0 : i32, i32
  }
  func.func @transform_13(%arg0: i32, %arg1: i32) -> (i32, i32, i32) {
    %c0_i32 = arith.constant 0 : i32
    %c0_i32_0 = arith.constant 0 : i32
    return %arg0, %c0_i32, %arg1 : i32, i32, i32
  }
}

</mosaic_0001>

<bundles_post_ra>
// kernel: tpu_custom_call.1
= control target key start
LH: loop header
LB: loop body
LE: loop exit
PB: predicated region body
PF: predicated region fallthrough
CT: control target
= control target key end

     0   :  { %s1908_s0 = inlined_call_operand.hbm [shape: f32[2,8,1024], index: 0, kind: input, shape index: {}]   ;;  %s1909_s1 = inlined_call_operand.hbm [shape: f32[2,8,1024], index: 1, kind: input, shape index: {}]   ;;  %s1910_s2 = inlined_call_operand.vmem [shape: f32[8,8], index: 2, kind: input, shape index: {}]   ;;  %s1911_s3 = inlined_call_operand.vmem [shape: f32[8,8], index: 3, kind: input, shape index: {}]   ;;  %s1912_s4 = inlined_call_operand.vmem [shape: f32[8,1], index: 4, kind: input, shape index: {}]   ;;  %s1913_s5 = inlined_call_operand.vmem [shape: f32[2,8], index: 5, kind: input, shape index: {}]   ;;  %s1914_s6 = inlined_call_operand.vmem [shape: f32[2,1], index: 6, kind: input, shape index: {}]   ;;  %s1915_s7 = inlined_call_operand.vmem [shape: f32[8,2], index: 7, kind: input, shape index: {}]   ;;  %s1916_s8 = inlined_call_operand.vmem [shape: f32[8,1], index: 8, kind: input, shape index: {}]   ;;  %s1917_s9 = inlined_call_operand.vmem [shape: f32[2,8], index: 9, kind: input, shape index: {}]   ;;  %s1918_s10 = inlined_call_operand.vmem [shape: f32[2,1], index: 10, kind: input, shape index: {}]   ;;  %s1919_s11 = inlined_call_operand.vmem [shape: f32[8,2], index: 11, kind: input, shape index: {}]   ;;  %s1920_s12 = inlined_call_operand.vmem [shape: f32[8,1], index: 12, kind: input, shape index: {}]   ;;  %s1921_s13 = inlined_call_operand.hbm [shape: f32[2,8,1024], index: 13, kind: output, shape index: {}]  }
   0x1   :  { %1930 = sst [smem:[#allocation20_spill]] %s1918_s10 }
   0x2   :  { %1931 = sst [smem:[#allocation21_spill]] %s1919_s11 }
   0x3   :  { %1932 = sst [smem:[#allocation22_spill]] %s1920_s12 }
   0x4   :  { %1933 = sst [smem:[#allocation23_spill]] %s1921_s13 }
   0x5   :  { %18 = vsyncpa [#allocation3], 0 }
   0x6   :  { %20 = vsyncpa [#allocation3 + $0x1], 0 }
   0x7   :  { %21 = vsyncpa [#allocation6], 0 }
   0x8   :  { %23 = vsyncpa [#allocation6 + $0x1], 0 }
   0x9   :  { %24 = vsyncpa [#allocation4], 0 }
   0xa   :  { %26 = vsyncpa [#allocation4 + $0x1], 0  ;;  %s1640_s25 = smov 0   ;;  %s1642_s26 = smov 0  }
   0xb   :  { %s1644_s27 = smov 0   ;;  %s1646_s28 = smov 0  }
   0xc   :  { %s1648_s29 = smov 0   ;;  %s1650_s30 = smov 0  }
   0xd   :  { %s1652_s14 = smov 0   ;;  %s1654_s15 = smov 0  }
   0xe LB: > { %1934 = sst [smem:[#allocation11_spill]] %s1539_s25  ;;  %s1251_s16 = sadd.s32 4294967295, %s1567_s15   ;;  %s1567_s15 = sphi %s1654_s15, %s32_s15   ;;  %s1563_s14 = sphi %s1652_s14, %s1960_s14   ;;  %s1559_s30 = sphi %s1650_s30, %s1959_s30   ;;  %s1555_s29 = sphi %s1648_s29, %s1958_s29   ;;  %s1551_s28 = sphi %s1646_s28, %s1957_s28   ;;  %s1547_s27 = sphi %s1644_s27, %s1963_s27   ;;  %s1543_s26 = sphi %s1642_s26, %s1962_s26   ;;  %s1539_s25 = sphi %s1640_s25, %s1961_s25  }
   0xf   : > { %1935 = sst [smem:[#allocation12_spill]] %s1551_s28  ;;  %s1252_s17 = sadd.s32 4294967294, %s1567_s15  }
  0x10   : > { %1936 = sst [smem:[#allocation13_spill]] %s1555_s29  ;;  %s41_s18 = sadd.s32 1, %s1559_s30 }
  0x11   : > { %1937 = sst [smem:[#allocation14_spill]] %s1559_s30  ;;  %s44_s19 = sadd.s32 1, %s1563_s14 }
  0x12   : > { %1938 = sst [smem:[#allocation15_spill]] %s1563_s14  ;;  %p42_p0 = scmp.ge.s32.totalorder %s41_s18, 2 }
  0x13   : > { %s53_s20 = sadd.s32 1, %s1547_s27  ;;  %p60_p1 = scmp.ne.s32.totalorder %s1547_s27, %s1543_s26 }
  0x14   : > { %p61_p2 = scmp.eq.s32.totalorder %s1567_s15, 0  ;;  %s1965_s18 = smov (%p42_p0, %s41_s18), 0 }
  0x15   : > { %1939 = sst [smem:[#allocation16_spill]] %s1965_s18  ;;  %s1967_s19 = smov (!%p42_p0, %s44_s19), %s1563_s14 }
  0x16   : > { %s49_s21 = ssub.s32 %s1559_s30, %s1965_s18  ;;  %p1693_p3 = por %p61_p2, %p60_p1 }
  0x17   : > { %p46_p4 = scmp.ge.s32.totalorder %s1967_s19, 2  ;;  %p66_p5 = scmp.ne.s32.totalorder %s1543_s26, %s1539_s25 }
  0x18   : > { %p67_p6 = scmp.eq.s32.totalorder %s1251_s16, 0  ;;  %p351_p7 = scmp.eq.s32.totalorder %s1251_s16, 3 }
  0x19   : > { %s1969_s19 = smov (%p46_p4, %s1967_s19), 0  ;;  %p357_p10 = scmp.eq.s32.totalorder %s1252_s17, 3 }
  0x1a   : > { %1941 = sst [smem:[#allocation17_spill]] %s1969_s19  ;;  %p1701_p8 = por %p67_p6, %p66_p5 }
  0x1b   : > { %p1705_p9 = por %p351_p7, %p60_p1  ;;  %s48_s18 = ssub.s32 %s1563_s14, %s1969_s19 }
  0x1c   : > { %s50_s13 = sor.u32 %s49_s21, %s48_s18  ;;  %p1711_p12 = por %p357_p10, %p66_p5 }
  0x1d   : > { %s1943_s24 = scalar_select %p1705_p9, 1, 0 }
  0x1e   : > { %p51_p11 = scmp.eq.s32.totalorder %s50_s13, 0  ;;  %p1320_p13 = scmp.lt.s32.totalorder %s1567_s15, 4 }
  0x1f   : > { %1944 = sst [smem:[#allocation18_spill]] %s1943_s24  ;;  %s410_s16 = sand.u32 1, %s1547_s27  }
  0x20   : > { %s1718_s29 = scalar_select %p51_p11, %s1547_s27, %s53_s20  }
  0x21   : > { %s1255_s28 = sshll.u32 %s410_s16, 5  ;;  %s1256_s12 = sshll.u32 %s1559_s30, 2 }
  0x22   : > { %1946 = sst [smem:[#allocation19_spill]] %s1718_s29  ;;  %s1257_s11 = sshll.u32 %s1563_s14, 3 }
  0x23   : > { %s414_s10 = scalar_lea.vmem [#allocation2], %s1255_s28  ;;  %s419_s19 = sadd.s32 %s1257_s11, %s1256_s12 }
  0x24   : > { %s425_s24 = sshll.u32 %s414_s10, 4  ;;  %s1258_s17 = sshll.u32 %s419_s19, 3  ;;  %s426_s24 = int_to_ptr.vmem [resolvable:$true] %s425_s24 }
  0x25   : > { %p1724_p0 = pnand %p1320_p13, %p1693_p3  ;;  %s421_s20 = scalar_lea.hbm %s1908_s0, %s1258_s17 }
  0x26   : > { %p1263_p1 = scmp.ge.s32.totalorder %s1567_s15, 1  ;;  %s423_s29 = sshll.u32 %s421_s20, 4  ;;  %s424_s29 = int_to_ptr.hbm [resolvable:$true] %s423_s29 }
  0x27   : > { %p452_p2 = scmp.lt.s32.totalorder %s1567_s15, 5  ;;  %s411_s14 = scalar_lea.sflag [#allocation3], %s410_s16 }
  0x28   : > { %1312 = dma.hbm_to_vmem [thread:$0]  (!%p1724_p0), %s424_s29, 512, %s426_s24, %s411_s14  }
  0x29   : > { %p453_p4 = pnand %p1263_p1, %p452_p2  ;;  %s443_s12 = scalar_lea.hbm %s1909_s1, %s1258_s17 }
  0x2a   : > { %s445_s19 = sshll.u32 %s443_s12, 4  ;;  %s436_s22 = scalar_lea.vmem [#allocation5], %s1255_s28  ;;  %s446_s19 = int_to_ptr.hbm [resolvable:$true] %s445_s19 }
  0x2b   : > { %s447_s30 = sshll.u32 %s436_s22, 4  ;;  %s433_s18 = scalar_lea.sflag [#allocation6], %s410_s16  ;;  %s448_s30 = int_to_ptr.vmem [resolvable:$true] %s447_s30 }
  0x2c   : > { %1315 = dma.hbm_to_vmem [thread:$0]  (!%p1724_p0), %s446_s19, 512, %s448_s30, %s433_s18  }
  0x2d   : > { %456 = sbr.rel (%p453_p4) target bundleno = 774 (0x306), region = 72  ;;  %s1741_s21 = sand.u32 (!%p453_p4), 1, %s1543_s26  }
  0x2e   : > { %s1744_s29 = sshll.u32 (!%p453_p4), %s1741_s21, 5  ;;  %s459_s14 = scalar_lea.sflag (!%p453_p4), [#allocation3], %s1741_s21 }
  0x2f   : > { %s462_s24 = scalar_lea.vmem (!%p453_p4), [#allocation2], %s1744_s29 }
  0x32   : > { %1526 = dma.done.wait (%p1701_p8), %s459_s14, 512  }
  0x33   : > { %1528 = vsyncadd (%p1701_p8), %s459_s14, 4294966784  ;;  %s469_s28 = scalar_lea.sflag [#allocation6], %s1741_s21  ;;  %s472_s30 = scalar_lea.vmem [#allocation5], %s1744_s29 }
  0x34   : > { %1530 = dma.done.wait (%p1701_p8), %s469_s28, 512  }
  0x35   : > { %1532 = vsyncadd (%p1701_p8), %s469_s28, 4294966784  ;;  %v1569_v0 = vmov 0   ;;  %v1758_v1 = vld [vmem:[%s472_s30] sm:$0xff]  ;;  %v1760_v2 = vld [vmem:[%s472_s30 + $0x8] sm:$0xff]  ;;  %vm534_vm0 = vcmask 64512   ;;  %vm820_vm1 = vcmask 1041408  }
  0x36   : > { %1387 = vset.pattern.permute.xlu0 %v1569_v0  ;;  %1388 = vset.pattern.permute.xlu2 %v1569_v0  ;;  %v1762_v3 = vld [vmem:[%s472_s30 + $0x10] sm:$0xff]  ;;  %v1766_v4 = vld [vmem:[%s472_s30 + $0x18] sm:$0xff]  ;;  %v533_v5 = vld [vmem:[%s1911_s3] sm:$0xff]  ;;  %vm816_vm2 = vcmask 15360   ;;  %s1948_s13 = sld [smem:[#allocation20_spill]]  ;;  %s1852_s18 = scalar_lea.vmem [#allocation7], %s1744_s29 }
  0x37   : > { %553 = vmatpush.msra.mxu0 %v1758_v1  ;;  %573 = vmatpush.msra.mxu1 %v1760_v2  ;;  %v524_v6 = vld [vmem:[%s462_s24] sm:$0xff]  ;;  %v525_v7 = vld [vmem:[%s462_s24 + $0x8] sm:$0xff]  ;;  %v526_v8 = vld [vmem:[%s462_s24 + $0x10] sm:$0xff]  ;;  %s1949_s11 = sld [smem:[#allocation21_spill]]  ;;  %s1120_s19 = scalar_lea.sflag [#allocation4], %s1741_s21 }
  0x38   : > { %593 = vmatpush.msra.mxu2 %v1762_v3  ;;  %613 = vmatpush.msra.mxu3 %v1766_v4  ;;  %v527_v9 = vld [vmem:[%s462_s24 + $0x18] sm:$0xff]  ;;  %v701_v10 = vld [vmem:[%s1912_s4] sm:$0xff]  ;;  %s1950_s22 = sld [smem:[#allocation22_spill]] }
  0x39   : > { %1267 = vmatmul.msk.f32.vlgmr.msra.gmra.mxu0 %vm534_vm0, %v533_v5  ;;  %1268 = vmatmul.msk.f32.vlgmr.msra.gmra.mxu1 %vm534_vm0, %v533_v5  ;;  %v532_v11 = vld [vmem:[%s1910_s2] sm:$0xff]  ;;  %s1951_s14 = sld [smem:[#allocation12_spill]] }
  0x3a   : > { %1269 = vmatmul.msk.f32.vlgmr.msra.gmra.mxu2 %vm534_vm0, %v533_v5  ;;  %1270 = vmatmul.msk.f32.vlgmr.msra.gmra.mxu3 %vm534_vm0, %v533_v5  ;;  %v716_v12 = vld [vmem:[%s1914_s6] sm:$0x3]  ;;  %s1952_s24 = sld [smem:[#allocation13_spill]] }
  0x3b   : > { %636 = vmatpush.msrb.mxu0 %v524_v6  ;;  %656 = vmatpush.msrb.mxu1 %v525_v7  ;;  %v715_v26 = vld [vmem:[%s1913_s5] sm:$0x3] }
  0x3c   : > { %676 = vmatpush.msrb.mxu2 %v526_v8  ;;  %696 = vmatpush.msrb.mxu3 %v527_v9  ;;  %v810_v37 = vld [vmem:[%s1916_s8] sm:$0xff] }
  0x3d   : > { %704 = vperm.xlu0 %1387, %v701_v10   ;;  %813 = vperm.xlu2 %1388, %v810_v37   ;;  %v809_v46 = vld [vmem:[%s1915_s7] sm:$0xff] }
  0x3e   : > { %v913_v48 = vld [vmem:[%s1917_s9] sm:$0x3] }
  0x3f   : > { %v914_v56 = vld [vmem:[%s1948_s13] sm:$0x3]  ;;  %s1298_s29 = sshll.u32 %s1951_s14, 2  ;;  %s1953_s13 = sld [smem:[#allocation23_spill]] }
  0x40   : > { %v915_v60 = vld [vmem:[%s1949_s11] sm:$0xff]  ;;  %s1299_s28 = sshll.u32 %s1952_s24, 3  ;;  %s1135_s11 = sshll.u32 %s1852_s18, 4  ;;  %s1136_s11 = int_to_ptr.vmem [resolvable:$true] %s1135_s11 }
  0x41   : > { %1271 = vmatmul.msk.f32.vlgmr.msrb.gmra.mxu0 %vm534_vm0, %v532_v11  ;;  %1272 = vmatmul.msk.f32.vlgmr.msrb.gmra.mxu1 %vm534_vm0, %v532_v11  ;;  %v916_v6 = vld [vmem:[%s1950_s22] sm:$0xff]  ;;  %s1131_s30 = sadd.s32 %s1299_s28, %s1298_s29 }
  0x42   : > { %1273 = vmatmul.msk.f32.vlgmr.msrb.gmra.mxu2 %vm534_vm0, %v532_v11  ;;  %1274 = vmatmul.msk.f32.vlgmr.msrb.gmra.mxu3 %vm534_vm0, %v532_v11  ;;  %s1300_s16 = sshll.u32 %s1131_s30, 3 }
  0x45   : > { %719 = vperm.xlu0 %1387, %v716_v12   ;;  %s1133_s20 = scalar_lea.hbm %s1953_s13, %s1300_s16  ;;  %s1485_s28 = scalar_lea.hbm %s1953_s13, 128 }
  0x46   : > { %s1137_s12 = sshll.u32 %s1133_s20, 4  ;;  %s1138_s12 = int_to_ptr.hbm [resolvable:$true] %s1137_s12 }
  0x47   : > { %s1479_s22 = sshra.s32 %s1138_s12, 4  ;;  %s1480_s22 = int_to_ptr.hbm [resolvable:$true] %s1479_s22 }
  0x48   : > { %s1481_s14 = scalar_lea.hbm %s1480_s22, 32  ;;  %p1486_p7 = scmp.lt.s32.totalorder %s1480_s22, %s1953_s13 }
  0x49   : > { %p1482_p3 = scmp.ne.s32.totalorder %s1480_s22, %s1481_s14  ;;  %p1487_p8 = scmp.lt.s32.totalorder %s1485_s28, %s1481_s14 }
  0x4b   : > { %p1483_p5 = pnand %p1482_p3, %p1705_p9  ;;  %p1488_p10 = por %p1487_p8, %p1486_p7 }
  0x4d   : > { %p1484_p6 = pneg %p1483_p5 }
  0x4f   : > { %p1489_p11 = pnand %p1488_p10, %p1484_p6 }
  0x97   : > { %v814_v12 = vpop.permute.xlu2 %813 }
  0xaf   : > { %v705_v21 = vpop.permute.xlu0 %704 }
  0xb6   : > { %v555_v13 = vpop.f32.mrf.mxu0  ;;  %v575_v14 = vpop.f32.mrf.mxu1 }
  0xb7   : > { %v720_v39 = vpop.permute.xlu0 %719 }
  0xbd   : > { %v595_v15 = vpop.f32.mrf.mxu2  ;;  %v615_v16 = vpop.f32.mrf.mxu3 }
  0xbe   : > { %v638_v17 = vpop.f32.mrf.mxu0  ;;  %v658_v18 = vpop.f32.mrf.mxu1 }
  0xbf   : > { %v639_v19 = vadd.f32 %v638_v17, %v555_v13  ;;  %v659_v20 = vadd.f32 %v658_v18, %v575_v14 }
  0xc1   : > { %v707_v22 = vadd.f32 %v705_v21, %v639_v19  ;;  %v708_v23 = vadd.f32 %v705_v21, %v659_v20 }
  0xc3   : > { %v1790_v24 = vmax.f32 %v707_v22, 0.0  ;;  %v1792_v25 = vmax.f32 %v708_v23, 0.0 }
  0xc5   : > { %v678_v27 = vpop.f32.mrf.mxu2  ;;  %v698_v28 = vpop.f32.mrf.mxu3  ;;  %740 = vmatpush.msra.mxu0 %v1790_v24  ;;  %760 = vmatpush.msra.mxu1 %v1792_v25  ;;  %v917_v36 = vadd.f32 %v1792_v25, %v1790_v24 }
  0xc6   : > { %v679_v29 = vadd.f32 %v678_v27, %v595_v15  ;;  %v699_v30 = vadd.f32 %v698_v28, %v615_v16  ;;  %1275 = vmatmul.msk.f32.vlgmr.msra.gmra.mxu0 %vm534_vm0, %v715_v26  ;;  %1276 = vmatmul.msk.f32.vlgmr.msra.gmra.mxu1 %vm534_vm0, %v715_v26 }
  0xc8   : > { %v709_v31 = vadd.f32 %v705_v21, %v679_v29  ;;  %v710_v32 = vadd.f32 %v705_v21, %v699_v30 }
  0xca   : > { %v1801_v33 = vmax.f32 %v709_v31, 0.0  ;;  %v1803_v34 = vmax.f32 %v710_v32, 0.0 }
  0xcc   : > { %780 = vmatpush.msra.mxu2 %v1801_v33  ;;  %800 = vmatpush.msra.mxu3 %v1803_v34  ;;  %v1021_v35 = vadd.f32 %v1803_v34, %v1801_v33 }
  0xcd   : > { %1277 = vmatmul.msk.f32.vlgmr.msra.gmra.mxu2 %vm534_vm0, %v715_v26  ;;  %1278 = vmatmul.msk.f32.vlgmr.msra.gmra.mxu3 %vm534_vm0, %v715_v26 }
  0xce   : > { %1022 = vadd.xlane.f32.xlu1 %v1021_v35 }
  0xd6   : > { %918 = vadd.xlane.f32.xlu1 %v917_v36 }
 0x141   : > { %v1023_v38 = vpop.xlane.xlu1 %1022 }
 0x143   : > { %v742_v40 = vpop.f32.mrf.mxu0  ;;  %v762_v41 = vpop.f32.mrf.mxu1 }
 0x144   : > { %v743_v42 = vadd.f32 %v742_v40, %v720_v39  ;;  %v763_v43 = vadd.f32 %v762_v41, %v720_v39 }
 0x146   : > { %v805_v44 = vmax.f32 %v743_v42, 0.0  ;;  %v806_v45 = vmax.f32 %v763_v43, 0.0 }
 0x148   : > { %1281 = vmatpush.msk.msrb.mxu1 %vm820_vm1, %v806_v45  ;;  %1279 = vmatpush.msk.msrb.mxu0 %vm820_vm1, %v805_v44 }
 0x149   : > { %v919_v47 = vpop.xlane.xlu1 %918  ;;  %1280 = vmatmul.msk.f32.vlgmr.msrb.gmra.mxu0 %vm816_vm2, %v809_v46  ;;  %1282 = vmatmul.msk.f32.vlgmr.msrb.gmra.mxu1 %vm816_vm2, %v809_v46 }
 0x14a   : > { %938 = vmatpush.msra.mxu0 %v919_v47 }
 0x150   : > { %v782_v49 = vpop.f32.mrf.mxu2  ;;  %v802_v50 = vpop.f32.mrf.mxu3 }
 0x151   : > { %v783_v51 = vadd.f32 %v782_v49, %v720_v39  ;;  %v803_v52 = vadd.f32 %v802_v50, %v720_v39  ;;  %1287 = vmatmul.msk.f32.vlgmr.msra.gmra.mxu0 %vm534_vm0, %v913_v48 }
 0x153   : > { %v807_v53 = vmax.f32 %v783_v51, 0.0  ;;  %v808_v54 = vmax.f32 %v803_v52, 0.0 }
 0x155   : > { %1283 = vmatpush.msk.msrb.mxu2 %vm820_vm1, %v807_v53  ;;  %1285 = vmatpush.msk.msrb.mxu3 %vm820_vm1, %v808_v54 }
 0x156   : > { %1284 = vmatmul.msk.f32.vlgmr.msrb.gmra.mxu2 %vm816_vm2, %v809_v46  ;;  %1286 = vmatmul.msk.f32.vlgmr.msrb.gmra.mxu3 %vm816_vm2, %v809_v46 }
 0x157   : > { %1039 = vmatpush.msra.mxu2 %v1023_v38 }
 0x15e   : > { %1292 = vmatmul.msk.f32.vlgmr.msra.gmra.mxu2 %vm534_vm0, %v913_v48 }
 0x1c6   : > { %v850_v55 = vpop.f32.mrf.mxu0  ;;  %v870_v5 = vpop.f32.mrf.mxu1 }
 0x1c7   : > { %v871_v13 = vadd.f32 %v870_v5, %v814_v12  ;;  %v851_v14 = vadd.f32 %v850_v55, %v814_v12 }
 0x1ce   : > { %v940_v57 = vpop.f32.mrf.mxu0 }
 0x1cf   : > { %v941_v58 = vadd.f32 %v940_v57, %v914_v56 }
 0x1d1   : > { %v943_v59 = vmax.f32 %v941_v58, 0.0 }
 0x1d3   : > { %1288 = vmatpush.msk.msra.mxu1 %vm820_vm1, %v943_v59 }
 0x1d4   : > { %1289 = vmatmul.msk.f32.vlgmr.msra.gmra.mxu1 %vm816_vm2, %v915_v60 }
 0x1d9   : > { %v1840_v61 = vpop.f32.mrf.mxu2  ;;  %v910_v9 = vpop.f32.mrf.mxu3 }
 0x1da   : > { %v891_v52 = vadd.f32 %v1840_v61, %v814_v12  ;;  %v911_v53 = vadd.f32 %v910_v9, %v814_v12 }
 0x1e1   : > { %v1041_v62 = vpop.f32.mrf.mxu2 }
 0x1e2   : > { %v1042_v63 = vadd.f32 %v1041_v62, %v914_v56 }
 0x1e4   : > { %v1044_v0 = vmax.f32 %v1042_v63, 0.0 }
 0x1e6   : > { %1293 = vmatpush.msk.msra.mxu3 %vm820_vm1, %v1044_v0 }
 0x1e7   : > { %1294 = vmatmul.msk.f32.vlgmr.msra.gmra.mxu3 %vm816_vm2, %v915_v60 }
 0x251   : > { %v967_v7 = vpop.f32.mrf.mxu1 }
 0x252   : > { %v968_v8 = vadd.f32 %v967_v7, %v916_v6 }
 0x254   : > { %972 = vperm.xlu2 %1388, %v968_v8  }
 0x26a   : > { %v1065_v10 = vpop.f32.mrf.mxu3 }
 0x26b   : > { %v1066_v11 = vadd.f32 %v1065_v10, %v916_v6 }
 0x26d   : > { %1070 = vperm.xlu0 %1387, %v1066_v11  }
 0x2ae   : > { %v973_v15 = vpop.permute.xlu2 %972 }
 0x2af   : > { %v975_v16 = vadd.f32 %v973_v15, %v851_v14  ;;  %v976_v17 = vadd.f32 %v973_v15, %v871_v13 }
 0x2b1   : > { %v1290_v18 = vmul.f32 -1.442695, %v975_v16  ;;  %v1291_v19 = vmul.f32 -1.442695, %v976_v17 }
 0x2b3   : > { %1389 = vpow2.f32 %v1290_v18 }
 0x2b4   : > { %1391 = vpow2.f32 %v1291_v19 }
 0x2b9   : > { %v1390_v20 = vpop.eup %1389 }
 0x2ba   : > { %v1392_v21 = vpop.eup %1391  ;;  %v983_v22 = vadd.f32 1.0, %v1390_v20 }
 0x2bb   : > { %v984_v23 = vadd.f32 1.0, %v1392_v21 }
 0x2bc   : > { %1393 = vrcp.f32 %v983_v22  ;;  %v996_v31 = vand.u32 2147483648, %v983_v22  ;;  %v994_v36 = vand.u32 2147483647, %v983_v22  ;;  %vm990_vm5 = vweird.f32 %v983_v22 }
 0x2bd   : > { %1395 = vrcp.f32 %v984_v23  ;;  %v1011_v37 = vand.u32 2147483648, %v984_v23  ;;  %v1009_v39 = vand.u32 2147483647, %v984_v23  ;;  %vm1005_vm7 = vweird.f32 %v984_v23 }
 0x2be   : > { %v997_v41 = vor.u32 1.1754944e-38, %v996_v31  ;;  %vm995_vm8 = vcmp.eq.f32.partialorder %v994_v36, 8.507059e+37 }
 0x2bf   : > { %v1012_v44 = vor.u32 1.1754944e-38, %v1011_v37  ;;  %vm1010_vm10 = vcmp.eq.f32.partialorder %v1009_v39, 8.507059e+37 }
 0x2c2   : > { %v1394_v26 = vpop.eup %1393 }
 0x2c3   : > { %v1396_v27 = vpop.eup %1395  ;;  %v986_v28 = vmul.f32 %v1394_v26, %v983_v22  ;;  %vm991_vm3 = vweird.f32 %v1394_v26 }
 0x2c4   : > { %v1001_v29 = vmul.f32 %v1396_v27, %v984_v23  ;;  %vm1006_vm4 = vweird.f32 %v1396_v27  ;;  %vm992_vm6 = vmor %vm990_vm5, %vm991_vm3 }
 0x2c5   : > { %v987_v30 = vsub.f32 1.0, %v986_v28  ;;  %vm1007_vm9 = vmor %vm1005_vm7, %vm1006_vm4 }
 0x2c6   : > { %v1002_v32 = vsub.f32 1.0, %v1001_v29 }
 0x2c7   : > { %v988_v35 = vmul.f32 %v1394_v26, %v987_v30 }
 0x2c8   : > { %v1003_v38 = vmul.f32 %v1396_v27, %v1002_v32 }
 0x2c9   : > { %v989_v40 = vadd.f32 %v1394_v26, %v988_v35 }
 0x2ca   : > { %v1004_v42 = vadd.f32 %v1396_v27, %v1003_v38 }
 0x2cb   : > { %v993_v43 = vsel %vm992_vm6, %v1394_v26, %v989_v40 }
 0x2cc   : > { %v998_v45 = vsel %vm995_vm8, %v997_v41, %v993_v43  ;;  %v1008_v46 = vsel %vm1007_vm9, %v1396_v27, %v1004_v42 }
 0x2cd   : > { %v1013_v47 = vsel %vm1010_vm10, %v1012_v44, %v1008_v46  ;;  %v1015_v48 = vmul.f32 %v998_v45, %v1790_v24 }
 0x2ce   : > { %v1016_v49 = vmul.f32 %v1013_v47, %v1792_v25 }
 0x2cf   : > { %v1017_v50 = vadd.f32 %v1015_v48, %v1758_v1 }
 0x2d0   : > { %v1018_v51 = vadd.f32 %v1016_v49, %v1760_v2 }
 0x2d1   : > { %1019 = vst [vmem:[%s1852_s18] sm:$0xff] %v1017_v50 }
 0x2d2   : > { %1020 = vst [vmem:[%s1852_s18 + $0x8] sm:$0xff] %v1018_v51 }
 0x2df   : > { %v1071_v54 = vpop.permute.xlu0 %1070 }
 0x2e0   : > { %v1073_v55 = vadd.f32 %v1071_v54, %v891_v52  ;;  %v1074_v24 = vadd.f32 %v1071_v54, %v911_v53 }
 0x2e2   : > { %v1295_v56 = vmul.f32 -1.442695, %v1073_v55  ;;  %v1296_v25 = vmul.f32 -1.442695, %v1074_v24 }
 0x2e4   : > { %1397 = vpow2.f32 %v1295_v56 }
 0x2e5   : > { %1399 = vpow2.f32 %v1296_v25 }
 0x2ea   : > { %v1398_v1 = vpop.eup %1397 }
 0x2eb   : > { %v1400_v2 = vpop.eup %1399  ;;  %v1081_v57 = vadd.f32 1.0, %v1398_v1 }
 0x2ec   : > { %v1082_v58 = vadd.f32 1.0, %v1400_v2 }
 0x2ed   : > { %1401 = vrcp.f32 %v1081_v57  ;;  %v1094_v0 = vand.u32 2147483648, %v1081_v57  ;;  %v1092_v7 = vand.u32 2147483647, %v1081_v57  ;;  %vm1088_vm13 = vweird.f32 %v1081_v57 }
 0x2ee   : > { %1403 = vrcp.f32 %v1082_v58  ;;  %v1109_v8 = vand.u32 2147483648, %v1082_v58  ;;  %v1107_v10 = vand.u32 2147483647, %v1082_v58  ;;  %vm1103_vm15 = vweird.f32 %v1082_v58 }
 0x2ef   : > { %v1095_v12 = vor.u32 1.1754944e-38, %v1094_v0  ;;  %vm1093_vm0 = vcmp.eq.f32.partialorder %v1092_v7, 8.507059e+37 }
 0x2f0   : > { %v1110_v15 = vor.u32 1.1754944e-38, %v1109_v8  ;;  %vm1108_vm2 = vcmp.eq.f32.partialorder %v1107_v10, 8.507059e+37 }
 0x2f3   : > { %v1402_v59 = vpop.eup %1401 }
 0x2f4   : > { %v1404_v60 = vpop.eup %1403  ;;  %v1084_v61 = vmul.f32 %v1402_v59, %v1081_v57  ;;  %vm1089_vm11 = vweird.f32 %v1402_v59 }
 0x2f5   : > { %v1099_v62 = vmul.f32 %v1404_v60, %v1082_v58  ;;  %vm1104_vm12 = vweird.f32 %v1404_v60  ;;  %vm1090_vm14 = vmor %vm1088_vm13, %vm1089_vm11 }
 0x2f6   : > { %v1085_v63 = vsub.f32 1.0, %v1084_v61  ;;  %vm1105_vm1 = vmor %vm1103_vm15, %vm1104_vm12 }
 0x2f7   : > { %v1100_v5 = vsub.f32 1.0, %v1099_v62 }
 0x2f8   : > { %v1086_v6 = vmul.f32 %v1402_v59, %v1085_v63 }
 0x2f9   : > { %v1101_v9 = vmul.f32 %v1404_v60, %v1100_v5 }
 0x2fa   : > { %v1087_v11 = vadd.f32 %v1402_v59, %v1086_v6 }
 0x2fb   : > { %v1102_v13 = vadd.f32 %v1404_v60, %v1101_v9 }
 0x2fc   : > { %v1091_v14 = vsel %vm1090_vm14, %v1402_v59, %v1087_v11 }
 0x2fd   : > { %v1096_v16 = vsel %vm1093_vm0, %v1095_v12, %v1091_v14  ;;  %v1106_v17 = vsel %vm1105_vm1, %v1404_v60, %v1102_v13 }
 0x2fe   : > { %v1111_v18 = vsel %vm1108_vm2, %v1110_v15, %v1106_v17  ;;  %v1113_v19 = vmul.f32 %v1096_v16, %v1801_v33 }
 0x2ff   : > { %v1114_v20 = vmul.f32 %v1111_v18, %v1803_v34 }
 0x300   : > { %v1115_v21 = vadd.f32 %v1113_v19, %v1762_v3 }
 0x301   : > { %v1116_v22 = vadd.f32 %v1114_v20, %v1766_v4 }
 0x302   : > { %1117 = vst [vmem:[%s1852_s18 + $0x10] sm:$0xff] %v1115_v21 }
 0x303   : > { %1118 = vst [vmem:[%s1852_s18 + $0x18] sm:$0xff] %v1116_v22 }
 0x304   : > { %1492 = shalt.err (!%p1489_p11)
}
 0x305   : > { %1307 = dma.vmem_to_hbm [thread:$0]  (%p1705_p9), %s1136_s11, 512, %s1138_s12, %s1120_s19  }
 0x306 PF: > { %s1955_s21 = sld [smem:[#allocation11_spill]]  ;;  %p1321_p13 = scmp.ge.s32.totalorder %s1567_s15, 2 }
 0x308   : > { %p1317_p0 = pnand %p1321_p13, %p1711_p12 }
 0x30a   : > { %p1318_p1 = pneg %p1317_p0 }
 0x30c   : > { %s1149_s18 = sand.u32 1, %s1955_s21  }
 0x30d   : > { %s1150_s17 = scalar_lea.sflag [#allocation4], %s1149_s18 }
 0x30e   : > { %1534 = dma.done.wait (%p1318_p1), %s1150_s17, 512  }
 0x30f   : > { %1536 = vsyncadd (%p1318_p1), %s1150_s17, 4294966784  ;;  %s32_s15 = sadd.s32 1, %s1567_s15   ;;  %s1956_s23 = sld [smem:[#allocation19_spill]] }
 0x310   : > { %p29_p2 = scmp.ge.s32.totalorder %s32_s15, 6   ;;  %s1957_s28 = sld [smem:[#allocation14_spill]] }
 0x311   : > { %s1958_s29 = sld [smem:[#allocation15_spill]]  ;;  %s1961_s25 = smov %s1543_s26 }
 0x312   : > { %s1959_s30 = sld [smem:[#allocation16_spill]]  ;;  %s1962_s26 = smov %s1547_s27 }
 0x313   : > { %s1960_s14 = sld [smem:[#allocation17_spill]]  ;;  %31 = sbr.rel (!%p29_p2) target bundleno = 14 (0xe), region = 130 }
 0x315   : > { %s1963_s27 = smov %s1956_s23 }
 0x318   :  { %1156 = vsyncpa [#allocation3], 1 }
 0x319   :  { %1158 = vsyncpa [#allocation3 + $0x1], 1 }
 0x31a   :  { %1159 = vsyncpa [#allocation6], 1 }
 0x31b   :  { %1161 = vsyncpa [#allocation6 + $0x1], 1 }
 0x31c   :  { %1162 = vsyncpa [#allocation4], 1 }
 0x31d   :  { %1164 = vsyncpa [#allocation4 + $0x1], 1 }

</bundles_post_ra>
